<compile_context>
chip_gen: v5e
topology: v5e:2x2
jax: 0.10.0
libtpu: 0.0.40
codegen_flags: <defaults>
</compile_context>

<pallas_src>
import numpy as np
import jax
import jax.numpy as jnp
from jax import lax
from jax.experimental import pallas as pl
from jax.experimental.pallas import tpu as pltpu


def _round_up(x, m):
    return ((x + m - 1) // m) * m


def _mlp_kernel(type_ref, x_ref, w1_ref, b1_ref, w2_ref, b2_ref, w3_ref, b3_ref, o_ref):
    # type_ref is only consumed by the index_maps (head selection); unused here.
    del type_ref

    x = x_ref[...].astype(jnp.float32)                         # [TB, S] native layout

    # Linear(steps -> 32) + ReLU.  Transpose is folded into the matmul: contract the
    # last axis of both operands (S), producing batch-on-lanes h1T = W1 @ x^T.
    # (f32 accumulate on the MXU; default precision is plenty for this head.)
    h1 = lax.dot_general(
        w1_ref[...], x,
        dimension_numbers=(((1,), (1,)), ((), ())),
        preferred_element_type=jnp.float32,
    ) + b1_ref[...]
    h1 = jnp.maximum(h1, 0.0)                                  # [32, TB]

    # Dropout(p=0.2): identity in eval mode.

    # Linear(32 -> 8) + ReLU  (MXU)
    h2 = jnp.dot(w2_ref[...], h1, preferred_element_type=jnp.float32) + b2_ref[...]
    h2 = jnp.maximum(h2, 0.0)                                  # [8, TB]

    # Linear(8 -> 1): VPU broadcast-multiply + sublane sum (XLU) — avoids a tiny MXU pass.
    out = jnp.sum(w3_ref[...] * h2, axis=0, keepdims=True) + b3_ref[...]   # [1, TB]

    o_ref[...] = out.astype(o_ref.dtype)


def reward_mode_sequance_forward(modes_vec, params, type_n=0, *, batch_tile=16384):
    """modes_vec: [B, steps] (f32 or bf16). params: stacked per-type weights (init_params).

    Returns [B, 1] float32 scores of the type_n head (matches RewardModeSequance.forward).
    """
    B, S = modes_vec.shape
    T, H1, S_w = params["W1"].shape
    assert S_w == S, (S_w, S)
    H2 = params["W2"].shape[1]

    # Batch tile: multiple of 128 (lane-dense [1, TB] output; sublane-aligned [TB, S]
    # input block).  Larger tiles amortize the ~0.35us fixed per-grid-step overhead.
    B_pad = _round_up(max(B, 1), 128)
    TB = min(_round_up(batch_tile, 128), B_pad)
    B_pad = _round_up(B_pad, TB)

    # No transpose of x.  Pad rows only when B doesn't divide the tile (padded rows
    # produce finite garbage that is sliced away below).
    x = modes_vec
    if B_pad != B:
        x = jnp.pad(modes_vec, ((0, B_pad - B), (0, 0)))

    # Final-layer weight as a column [T, H2, 1] for the in-kernel VPU reduction
    # (parameters are stored in native PyTorch [out, in] layout).
    w3_col = jnp.swapaxes(params["W3"], 1, 2)                  # [T, 8, 1]
    type_idx = jnp.asarray([type_n], dtype=jnp.int32)

    grid = (B_pad // TB,)
    grid_spec = pltpu.PrefetchScalarGridSpec(
        num_scalar_prefetch=1,
        grid=grid,
        in_specs=[
            # streamed input tile: contiguous rows of the caller's [B, S] array.
            pl.BlockSpec((TB, S), lambda i, t: (i, 0)),
            # per-head parameters: selected once via the scalar-prefetch index,
            # constant across the batch grid => stay resident in VMEM.
            pl.BlockSpec((None, H1, S), lambda i, t: (t[0], 0, 0)),   # W1 [32, S]
            pl.BlockSpec((None, H1, 1), lambda i, t: (t[0], 0, 0)),   # B1 [32, 1]
            pl.BlockSpec((None, H2, H1), lambda i, t: (t[0], 0, 0)),  # W2 [8, 32]
            pl.BlockSpec((None, H2, 1), lambda i, t: (t[0], 0, 0)),   # B2 [8, 1]
            pl.BlockSpec((None, H2, 1), lambda i, t: (t[0], 0, 0)),   # W3 col [8, 1]
            pl.BlockSpec((None, 1, 1), lambda i, t: (t[0], 0, 0)),    # B3 [1, 1]
        ],
        out_specs=pl.BlockSpec((1, TB), lambda i, t: (0, i)),         # lane-dense output
    )

    outT = pl.pallas_call(
        _mlp_kernel,
        out_shape=jax.ShapeDtypeStruct((1, B_pad), jnp.float32),      # pinned to f32
        grid_spec=grid_spec,
        compiler_params=pltpu.CompilerParams(
            dimension_semantics=("parallel",),      # batch tiles split across TCs on v7x
            # Covers double-buffered lane-padded x tiles + Mosaic-materialized h1/h2 up
            # to TB~32768, while leaving headroom under v7x's 64 MiB physical VMEM.
            vmem_limit_bytes=48 * 1024 * 1024,
        ),
    )(type_idx, x, params["W1"], params["B1"], params["W2"], params["B2"],
      w3_col, params["B3"])

    return jnp.swapaxes(outT[:, :B], 0, 1)                     # [B, 1] float32


def init_params(key, steps=18, types=3):
    """Deterministic init mirroring layer_init: orthogonal(std=sqrt(2)), bias=0.

    Weights are stored stacked over types in native PyTorch [out_features, in_features]
    layout; biases as [types, out_features, 1] columns (broadcast over batch lanes).
    """
    orth = jax.nn.initializers.orthogonal(scale=np.sqrt(2.0))
    w1s, w2s, w3s = [], [], []
    for _ in range(types):
        k1, k2, k3, key = jax.random.split(key, 4)
        w1s.append(orth(k1, (32, steps), jnp.float32))   # Linear(steps, 32).weight
        w2s.append(orth(k2, (8, 32), jnp.float32))       # Linear(32, 8).weight
        w3s.append(orth(k3, (1, 8), jnp.float32))        # Linear(8, 1).weight
    return {
        "W1": jnp.stack(w1s),                            # [T, 32, steps]
        "B1": jnp.zeros((types, 32, 1), jnp.float32),
        "B2": jnp.zeros((types, 8, 1), jnp.float32),
        "W2": jnp.stack(w2s),                            # [T, 8, 32]
        "W3": jnp.stack(w3s),                            # [T, 1, 8]
        "B3": jnp.zeros((types, 1, 1), jnp.float32),
    }


def _reference_forward(modes_vec, params, type_n):
    """Pure-JAX reference of the same math (PyTorch Linear: y = x @ W.T + b)."""
    w1, b1 = params["W1"][type_n], params["B1"][type_n][:, 0]
    w2, b2 = params["W2"][type_n], params["B2"][type_n][:, 0]
    w3, b3 = params["W3"][type_n], params["B3"][type_n][:, 0]
    h1 = jnp.maximum(modes_vec.astype(jnp.float32) @ w1.T + b1, 0.0)
    h2 = jnp.maximum(h1 @ w2.T + b2, 0.0)
    return h2 @ w3.T + b3


if __name__ == "__main__":
    key = jax.random.PRNGKey(0)
    k_param, k_data, k_data2, k_b1, k_b2, k_b3 = jax.random.split(key, 6)

    n_modes = 20   # unused by forward() itself, kept for module fidelity
    steps = 18
    batch = 8
    type_n = 1

    params = init_params(k_param, steps=steps, types=3)
    # Perturb biases away from the layer_init zeros so the bias-add path is actually
    # exercised by the numerical check (kernel and reference see the same values).
    params["B1"] = 0.05 * jax.random.normal(k_b1, params["B1"].shape, jnp.float32)
    params["B2"] = 0.05 * jax.random.normal(k_b2, params["B2"].shape, jnp.float32)
    params["B3"] = 0.05 * jax.random.normal(k_b3, params["B3"].shape, jnp.float32)

    # --- small single-tile check (B=8 -> one 128-lane tile) ---
    modes_vec = jax.random.normal(k_data, (batch, steps), dtype=jnp.float32)
    score = reward_mode_sequance_forward(modes_vec, params, type_n=type_n)
    score = jax.block_until_ready(score)
    assert score.shape == (batch, 1)
    ref = _reference_forward(modes_vec, params, type_n)
    np.testing.assert_allclose(np.asarray(score), np.asarray(ref), rtol=1e-5, atol=1e-5)

    # --- multi-tile / ragged-batch check (B=272, tile=128 -> grid of 3 with padding) ---
    batch2, type_n2 = 272, 2
    modes_vec2 = jax.random.normal(k_data2, (batch2, steps), dtype=jnp.float32)
    score2 = reward_mode_sequance_forward(modes_vec2, params, type_n=type_n2, batch_tile=128)
    score2 = jax.block_until_ready(score2)
    assert score2.shape == (batch2, 1)
    ref2 = _reference_forward(modes_vec2, params, type_n2)
    np.testing.assert_allclose(np.asarray(score2), np.asarray(ref2), rtol=1e-5, atol=1e-5)

    print("KERNEL_OK")
</pallas_src>

<mosaic_0001>
module attributes {stable_mosaic.version = 11 : i64} {
  func.func @_mlp_kernel(%arg0: i32, %arg1: memref<1xi32, #tpu.memory_space<smem>>, %arg2: memref<128x18xf32, #tpu.memory_space<vmem>>, %arg3: memref<1x32x18xf32, #tpu.memory_space<vmem>>, %arg4: memref<1x32x1xf32, #tpu.memory_space<vmem>>, %arg5: memref<1x8x32xf32, #tpu.memory_space<vmem>>, %arg6: memref<1x8x1xf32, #tpu.memory_space<vmem>>, %arg7: memref<1x8x1xf32, #tpu.memory_space<vmem>>, %arg8: memref<1x1x1xf32, #tpu.memory_space<vmem>>, %arg9: memref<1x128xf32, #tpu.memory_space<vmem>>) attributes {dimension_semantics = [#tpu.dimension_semantics<parallel>], iteration_bounds = array<i64: 1>, scalar_prefetch = 1 : i64, scratch_operands = 0 : i64, tpu.core_type = #tpu.core_type<tc>, window_params = [{transform_indices = @transform_0, window_bounds = array<i64: 128, 18>}, {transform_indices = @transform_1, window_bounds = array<i64: 1, 32, 18>}, {transform_indices = @transform_2, window_bounds = array<i64: 1, 32, 1>}, {transform_indices = @transform_3, window_bounds = array<i64: 1, 8, 32>}, {transform_indices = @transform_4, window_bounds = array<i64: 1, 8, 1>}, {transform_indices = @transform_5, window_bounds = array<i64: 1, 8, 1>}, {transform_indices = @transform_6, window_bounds = array<i64: 1, 1, 1>}, {transform_indices = @transform_7, window_bounds = array<i64: 1, 128>}]} {
    %c0 = arith.constant 0 : index
    %c0_0 = arith.constant 0 : index
    %0 = vector.load %arg2[%c0, %c0_0] : memref<128x18xf32, #tpu.memory_space<vmem>>, vector<128x18xf32>
    %c0_1 = arith.constant 0 : index
    %c0_2 = arith.constant 0 : index
    %c0_3 = arith.constant 0 : index
    %1 = vector.load %arg3[%c0_1, %c0_2, %c0_3] : memref<1x32x18xf32, #tpu.memory_space<vmem>>, vector<1x32x18xf32>
    %2 = vector.shape_cast %1 : vector<1x32x18xf32> to vector<32x18xf32>
    %cst = arith.constant dense<0.000000e+00> : vector<32x128xf32>
    %3 = tpu.matmul %2, %0, %cst {dimension_numbers = #tpu.dot_dimension_numbers<[1], [1], [0], [0], [0, 0, 1, 0], [], []>} : vector<32x18xf32>, vector<128x18xf32>, vector<32x128xf32> -> vector<32x128xf32>
    %c0_4 = arith.constant 0 : index
    %c0_5 = arith.constant 0 : index
    %c0_6 = arith.constant 0 : index
    %4 = vector.load %arg4[%c0_4, %c0_5, %c0_6] : memref<1x32x1xf32, #tpu.memory_space<vmem>>, vector<1x32x1xf32>
    %5 = vector.shape_cast %4 : vector<1x32x1xf32> to vector<32x1xf32>
    %6 = vector.broadcast %5 : vector<32x1xf32> to vector<32x128xf32>
    %7 = arith.addf %3, %6 : vector<32x128xf32>
    %cst_7 = arith.constant 0.000000e+00 : f32
    %8 = vector.broadcast %cst_7 : f32 to vector<32x128xf32>
    %9 = arith.maximumf %7, %8 : vector<32x128xf32>
    %c0_8 = arith.constant 0 : index
    %c0_9 = arith.constant 0 : index
    %c0_10 = arith.constant 0 : index
    %10 = vector.load %arg5[%c0_8, %c0_9, %c0_10] : memref<1x8x32xf32, #tpu.memory_space<vmem>>, vector<1x8x32xf32>
    %11 = vector.shape_cast %10 : vector<1x8x32xf32> to vector<8x32xf32>
    %cst_11 = arith.constant dense<0.000000e+00> : vector<8x128xf32>
    %12 = tpu.matmul %11, %9, %cst_11 {dimension_numbers = #tpu.dot_dimension_numbers<[1], [0], [0], [1], [0, 0, 1, 1], [], []>} : vector<8x32xf32>, vector<32x128xf32>, vector<8x128xf32> -> vector<8x128xf32>
    %c0_12 = arith.constant 0 : index
    %c0_13 = arith.constant 0 : index
    %c0_14 = arith.constant 0 : index
    %13 = vector.load %arg6[%c0_12, %c0_13, %c0_14] : memref<1x8x1xf32, #tpu.memory_space<vmem>>, vector<1x8x1xf32>
    %14 = vector.shape_cast %13 : vector<1x8x1xf32> to vector<8x1xf32>
    %15 = vector.broadcast %14 : vector<8x1xf32> to vector<8x128xf32>
    %16 = arith.addf %12, %15 : vector<8x128xf32>
    %cst_15 = arith.constant 0.000000e+00 : f32
    %17 = vector.broadcast %cst_15 : f32 to vector<8x128xf32>
    %18 = arith.maximumf %16, %17 : vector<8x128xf32>
    %c0_16 = arith.constant 0 : index
    %c0_17 = arith.constant 0 : index
    %c0_18 = arith.constant 0 : index
    %19 = vector.load %arg7[%c0_16, %c0_17, %c0_18] : memref<1x8x1xf32, #tpu.memory_space<vmem>>, vector<1x8x1xf32>
    %20 = vector.shape_cast %19 : vector<1x8x1xf32> to vector<8x1xf32>
    %21 = vector.broadcast %20 : vector<8x1xf32> to vector<8x128xf32>
    %22 = arith.mulf %21, %18 : vector<8x128xf32>
    %cst_19 = arith.constant dense<0.000000e+00> : vector<128xf32>
    %23 = vector.multi_reduction <add>, %22, %cst_19 [0] : vector<8x128xf32> to vector<128xf32>
    %24 = vector.shape_cast %23 : vector<128xf32> to vector<1x128xf32>
    %c0_20 = arith.constant 0 : index
    %c0_21 = arith.constant 0 : index
    %c0_22 = arith.constant 0 : index
    %25 = vector.load %arg8[%c0_20, %c0_21, %c0_22] : memref<1x1x1xf32, #tpu.memory_space<vmem>>, vector<1x1x1xf32>
    %26 = vector.shape_cast %25 : vector<1x1x1xf32> to vector<1x1xf32>
    %27 = vector.broadcast %26 : vector<1x1xf32> to vector<1x128xf32>
    %28 = arith.addf %24, %27 : vector<1x128xf32>
    %c0_23 = arith.constant 0 : index
    %c0_24 = arith.constant 0 : index
    %29 = vector.load %arg9[%c0_23, %c0_24] : memref<1x128xf32, #tpu.memory_space<vmem>>, vector<1x128xf32>
    tpu.vector_store %arg9[%c0_23, %c0_24], %28 {strides = array<i32>} : memref<1x128xf32, #tpu.memory_space<vmem>>, vector<1x128xf32>,
    return
  }
  func.func @transform_0(%arg0: i32, %arg1: memref<1xi32, #tpu.memory_space<smem>>) -> (i32, i32) {
    %c0_i32 = arith.constant 0 : i32
    %c0_i32_0 = arith.constant 0 : i32
    return %arg0, %c0_i32 : i32, i32
  }
  func.func @transform_1(%arg0: i32, %arg1: memref<1xi32, #tpu.memory_space<smem>>) -> (i32, i32, i32) {
    %c0 = arith.constant 0 : index
    %0 = memref.load %arg1[%c0] : memref<1xi32, #tpu.memory_space<smem>>
    %c0_i32 = arith.constant 0 : i32
    %c0_i32_0 = arith.constant 0 : i32
    %c0_i32_1 = arith.constant 0 : i32
    return %0, %c0_i32, %c0_i32_0 : i32, i32, i32
  }
  func.func @transform_2(%arg0: i32, %arg1: memref<1xi32, #tpu.memory_space<smem>>) -> (i32, i32, i32) {
    %c0 = arith.constant 0 : index
    %0 = memref.load %arg1[%c0] : memref<1xi32, #tpu.memory_space<smem>>
    %c0_i32 = arith.constant 0 : i32
    %c0_i32_0 = arith.constant 0 : i32
    %c0_i32_1 = arith.constant 0 : i32
    return %0, %c0_i32, %c0_i32_0 : i32, i32, i32
  }
  func.func @transform_3(%arg0: i32, %arg1: memref<1xi32, #tpu.memory_space<smem>>) -> (i32, i32, i32) {
    %c0 = arith.constant 0 : index
    %0 = memref.load %arg1[%c0] : memref<1xi32, #tpu.memory_space<smem>>
    %c0_i32 = arith.constant 0 : i32
    %c0_i32_0 = arith.constant 0 : i32
    %c0_i32_1 = arith.constant 0 : i32
    return %0, %c0_i32, %c0_i32_0 : i32, i32, i32
  }
  func.func @transform_4(%arg0: i32, %arg1: memref<1xi32, #tpu.memory_space<smem>>) -> (i32, i32, i32) {
    %c0 = arith.constant 0 : index
    %0 = memref.load %arg1[%c0] : memref<1xi32, #tpu.memory_space<smem>>
    %c0_i32 = arith.constant 0 : i32
    %c0_i32_0 = arith.constant 0 : i32
    %c0_i32_1 = arith.constant 0 : i32
    return %0, %c0_i32, %c0_i32_0 : i32, i32, i32
  }
  func.func @transform_5(%arg0: i32, %arg1: memref<1xi32, #tpu.memory_space<smem>>) -> (i32, i32, i32) {
    %c0 = arith.constant 0 : index
    %0 = memref.load %arg1[%c0] : memref<1xi32, #tpu.memory_space<smem>>
    %c0_i32 = arith.constant 0 : i32
    %c0_i32_0 = arith.constant 0 : i32
    %c0_i32_1 = arith.constant 0 : i32
    return %0, %c0_i32, %c0_i32_0 : i32, i32, i32
  }
  func.func @transform_6(%arg0: i32, %arg1: memref<1xi32, #tpu.memory_space<smem>>) -> (i32, i32, i32) {
    %c0 = arith.constant 0 : index
    %0 = memref.load %arg1[%c0] : memref<1xi32, #tpu.memory_space<smem>>
    %c0_i32 = arith.constant 0 : i32
    %c0_i32_0 = arith.constant 0 : i32
    %c0_i32_1 = arith.constant 0 : i32
    return %0, %c0_i32, %c0_i32_0 : i32, i32, i32
  }
  func.func @transform_7(%arg0: i32, %arg1: memref<1xi32, #tpu.memory_space<smem>>) -> (i32, i32) {
    %c0_i32 = arith.constant 0 : i32
    %c0_i32_0 = arith.constant 0 : i32
    return %c0_i32, %arg0 : i32, i32
  }
}

</mosaic_0001>

<bundles_post_ra>
// kernel: tpu_custom_call.1
= control target key start
LH: loop header
LB: loop body
LE: loop exit
PB: predicated region body
PF: predicated region fallthrough
CT: control target
= control target key end

     0   :  { %vm178_vm0 = vcmask 146432   ;;  %s651_s0 = inlined_call_operand.<no memory space> [shape: s32[1], index: 0, kind: input, shape index: {}]   ;;  %s652_s1 = inlined_call_operand.vmem [shape: f32[128,18], index: 1, kind: input, shape index: {}]   ;;  %s653_s2 = inlined_call_operand.vmem [shape: f32[3,32,18], index: 2, kind: input, shape index: {}]   ;;  %s654_s3 = inlined_call_operand.vmem [shape: f32[3,32,1], index: 3, kind: input, shape index: {}]   ;;  %s655_s4 = inlined_call_operand.vmem [shape: f32[3,8,32], index: 4, kind: input, shape index: {}]   ;;  %s656_s5 = inlined_call_operand.vmem [shape: f32[3,8,1], index: 5, kind: input, shape index: {}]   ;;  %s657_s6 = inlined_call_operand.vmem [shape: f32[3,8,1], index: 6, kind: input, shape index: {}]   ;;  %s658_s7 = inlined_call_operand.vmem [shape: f32[3,1,1], index: 7, kind: input, shape index: {}]   ;;  %s659_s8 = inlined_call_operand.hbm [shape: f32[1,128], index: 8, kind: output, shape index: {}]  }
   0x1   :  { %v149_v0 = vld [vmem:[%s652_s1 + $0x78] sm:$0xff]  ;;  %v148_v1 = vld [vmem:[%s652_s1 + $0x70] sm:$0xff] }
   0x2   :  { %406 = vmatpush.xpose.msk.msra.mxu3 %vm178_vm0, %v149_v0  ;;  %405 = vmatpush.xpose.msk.msra.mxu2 %vm178_vm0, %v149_v0 }
   0x3   :  { %382 = vmatpush.xpose.msk.msra.mxu0 %vm178_vm0, %v149_v0 }
   0x4   :  { %14 = vsyncpa [#allocation5], 0  ;;  %v147_v2 = vld [vmem:[%s652_s1 + $0x68] sm:$0xff]  ;;  %v146_v3 = vld [vmem:[%s652_s1 + $0x60] sm:$0xff]  ;;  %p98_p0 = scmp.lt.s32.totalorder %s651_s0, 2  ;;  %v468_v11 = vmov 0  }
   0x5   :  { %v145_v4 = vld [vmem:[%s652_s1 + $0x58] sm:$0xff]  ;;  %v144_v5 = vld [vmem:[%s652_s1 + $0x50] sm:$0xff]  ;;  %v143_v6 = vld [vmem:[%s652_s1 + $0x48] sm:$0xff]  ;;  %439 = vset.pattern.permute.xlu0 %v468_v11  ;;  %440 = vset.pattern.permute.xlu1 %v468_v11  ;;  %vm279_vm1 = vcmask 261120   ;;  %s333_s12 = sshll.u32 %s659_s8, 4  ;;  %s334_s12 = int_to_ptr.hbm [resolvable:$true] %s333_s12 }
   0x6   :  { %408 = vmatpush.xpose.msk.msra.mxu3 %vm178_vm0, %v148_v1  ;;  %407 = vmatpush.xpose.msk.msra.mxu2 %vm178_vm0, %v148_v1  ;;  %s661_s0 = smov (!%p98_p0, %s651_s0), 2  ;;  %v142_v7 = vld [vmem:[%s652_s1 + $0x40] sm:$0xff]  ;;  %v141_v8 = vld [vmem:[%s652_s1 + $0x38] sm:$0xff]  ;;  %v140_v10 = vld [vmem:[%s652_s1 + $0x30] sm:$0xff] }
   0x7   :  { %383 = vmatpush.xpose.msk.msra.mxu0 %vm178_vm0, %v148_v1  ;;  %s403_s25 = sshll.u32 %s661_s0, 5  ;;  %441 = vset.pattern.permute.xlu2 %v468_v11  ;;  %v139_v12 = vld [vmem:[%s652_s1 + $0x28] sm:$0xff]  ;;  %v138_v15 = vld [vmem:[%s652_s1 + $0x20] sm:$0xff]  ;;  %s132_s16 = scalar_lea.vmem %s658_s7, %s661_s0  ;;  %v137_v16 = vld [vmem:[%s652_s1 + $0x18] sm:$0xff] }
   0x8   :  { %s109_s28 = scalar_lea.vmem %s654_s3, %s403_s25  ;;  %v317_v18 = vld [vmem:[%s132_s16] sm:$0x1]  ;;  %v136_v19 = vld [vmem:[%s652_s1 + $0x10] sm:$0xff]  ;;  %v135_v20 = vld [vmem:[%s652_s1 + $0x8] sm:$0xff]  ;;  %s102_s27 = scalar_lea.vmem %s653_s2, %s403_s25 }
   0x9   :  { %v157_v9 = vld [vmem:[%s109_s28 + $0x18] sm:$0xff]  ;;  %v156_v13 = vld [vmem:[%s109_s28 + $0x10] sm:$0xff]  ;;  %v155_v14 = vld [vmem:[%s109_s28 + $0x8] sm:$0xff] }
   0xa   :  { %410 = vmatpush.xpose.msk.msra.mxu3 %vm178_vm0, %v147_v2  ;;  %409 = vmatpush.xpose.msk.msra.mxu2 %vm178_vm0, %v147_v2  ;;  %v154_v17 = vld [vmem:[%s109_s28] sm:$0xff]  ;;  %v152_v22 = vld [vmem:[%s102_s27 + $0x10] sm:$0xff]  ;;  %v151_v23 = vld [vmem:[%s102_s27 + $0x8] sm:$0xff] }
   0xb   :  { %384 = vmatpush.xpose.msk.msra.mxu0 %vm178_vm0, %v147_v2  ;;  %175 = vperm.xlu0 %439, %v157_v9   ;;  %v134_v21 = vld [vmem:[%s652_s1] sm:$0xff]  ;;  %v153_v25 = vld [vmem:[%s102_s27 + $0x18] sm:$0xff]  ;;  %s379_s1 = sshll.u32 %s661_s0, 3 }
   0xc   :  { %165 = vperm.xlu1 %440, %v155_v14   ;;  %v150_v24 = vld [vmem:[%s102_s27] sm:$0xff]  ;;  %s121_s28 = scalar_lea.vmem %s656_s5, %s379_s1  ;;  %s127_s9 = scalar_lea.vmem %s657_s6, %s379_s1 }
   0xd   :  { %v273_v26 = vld [vmem:[%s121_s28] sm:$0xff]  ;;  %s115_s6 = scalar_lea.vmem %s655_s4, %s379_s1  ;;  %s469_s4 = smov [#allocation4]  }
   0xe   :  { %412 = vmatpush.xpose.msk.msra.mxu3 %vm178_vm0, %v146_v3  ;;  %411 = vmatpush.xpose.msk.msra.mxu2 %vm178_vm0, %v146_v3  ;;  %v304_v27 = vld [vmem:[%s127_s9] sm:$0xff]  ;;  %s331_s10 = sshll.u32 %s469_s4, 4  ;;  %s332_s10 = int_to_ptr.vmem [resolvable:$true] %s331_s10 }
   0xf   :  { %385 = vmatpush.xpose.msk.msra.mxu0 %vm178_vm0, %v146_v3  ;;  %276 = vperm.xlu2 %441, %v273_v26   ;;  %v272_v44 = vld [vmem:[%s115_s6] sm:$0xff] }
  0x12   :  { %414 = vmatpush.xpose.msk.msra.mxu3 %vm178_vm0, %v145_v4  ;;  %413 = vmatpush.xpose.msk.msra.mxu2 %vm178_vm0, %v145_v4 }
  0x13   :  { %386 = vmatpush.xpose.msk.msra.mxu0 %vm178_vm0, %v145_v4  ;;  %170 = vperm.xlu0 %439, %v156_v13  }
  0x14   :  { %160 = vperm.xlu1 %440, %v154_v17  }
  0x16   :  { %416 = vmatpush.xpose.msk.msra.mxu3 %vm178_vm0, %v144_v5  ;;  %415 = vmatpush.xpose.msk.msra.mxu2 %vm178_vm0, %v144_v5 }
  0x17   :  { %387 = vmatpush.xpose.msk.msra.mxu0 %vm178_vm0, %v144_v5  ;;  %307 = vperm.xlu2 %441, %v304_v27  }
  0x1a   :  { %418 = vmatpush.xpose.msk.msra.mxu3 %vm178_vm0, %v143_v6  ;;  %417 = vmatpush.xpose.msk.msra.mxu2 %vm178_vm0, %v143_v6 }
  0x1b   :  { %388 = vmatpush.xpose.msk.msra.mxu0 %vm178_vm0, %v143_v6  ;;  %320 = vperm.xlu0 %439, %v317_v18  }
  0x1e   :  { %420 = vmatpush.xpose.msk.msra.mxu3 %vm178_vm0, %v142_v7  ;;  %419 = vmatpush.xpose.msk.msra.mxu2 %vm178_vm0, %v142_v7 }
  0x1f   :  { %389 = vmatpush.xpose.msk.msra.mxu0 %vm178_vm0, %v142_v7 }
  0x22   :  { %422 = vmatpush.xpose.msk.msra.mxu3 %vm178_vm0, %v141_v8  ;;  %421 = vmatpush.xpose.msk.msra.mxu2 %vm178_vm0, %v141_v8 }
  0x23   :  { %390 = vmatpush.xpose.msk.msra.mxu0 %vm178_vm0, %v141_v8 }
  0x26   :  { %424 = vmatpush.xpose.msk.msra.mxu3 %vm178_vm0, %v140_v10  ;;  %423 = vmatpush.xpose.msk.msra.mxu2 %vm178_vm0, %v140_v10 }
  0x27   :  { %391 = vmatpush.xpose.msk.msra.mxu0 %vm178_vm0, %v140_v10 }
  0x2a   :  { %426 = vmatpush.xpose.msk.msra.mxu3 %vm178_vm0, %v139_v12  ;;  %425 = vmatpush.xpose.msk.msra.mxu2 %vm178_vm0, %v139_v12 }
  0x2b   :  { %392 = vmatpush.xpose.msk.msra.mxu0 %vm178_vm0, %v139_v12 }
  0x2e   :  { %428 = vmatpush.xpose.msk.msra.mxu3 %vm178_vm0, %v138_v15  ;;  %427 = vmatpush.xpose.msk.msra.mxu2 %vm178_vm0, %v138_v15 }
  0x2f   :  { %393 = vmatpush.xpose.msk.msra.mxu0 %vm178_vm0, %v138_v15 }
  0x32   :  { %430 = vmatpush.xpose.msk.msra.mxu3 %vm178_vm0, %v137_v16  ;;  %429 = vmatpush.xpose.msk.msra.mxu2 %vm178_vm0, %v137_v16 }
  0x33   :  { %394 = vmatpush.xpose.msk.msra.mxu0 %vm178_vm0, %v137_v16 }
  0x36   :  { %432 = vmatpush.xpose.msk.msra.mxu3 %vm178_vm0, %v136_v19  ;;  %431 = vmatpush.xpose.msk.msra.mxu2 %vm178_vm0, %v136_v19 }
  0x37   :  { %395 = vmatpush.xpose.msk.msra.mxu0 %vm178_vm0, %v136_v19 }
  0x3a   :  { %434 = vmatpush.xpose.msk.msra.mxu3 %vm178_vm0, %v135_v20  ;;  %433 = vmatpush.xpose.msk.msra.mxu2 %vm178_vm0, %v135_v20 }
  0x3b   :  { %396 = vmatpush.xpose.msk.msra.mxu0 %vm178_vm0, %v135_v20 }
  0x3e   :  { %436 = vmatpush.xpose.msk.msra.mxu3 %vm178_vm0, %v134_v21  ;;  %435 = vmatpush.xpose.msk.msra.mxu2 %vm178_vm0, %v134_v21 }
  0x3f   :  { %397 = vmatpush.xpose.msk.msra.mxu0 %vm178_vm0, %v134_v21 }
  0x41   :  { %400 = vmatmul.msk.f32.vlgmr.msra.gmra.mxu3 %vm178_vm0, %v152_v22  ;;  %399 = vmatmul.msk.f32.vlgmr.msra.gmra.mxu2 %vm178_vm0, %v151_v23 }
  0x42   :  { %398 = vmatmul.msk.f32.vlgmr.msra.gmra.mxu0 %vm178_vm0, %v150_v24 }
  0x49   :  { %401 = vmatmul.msk.f32.gmra.mxu3 %vm178_vm0, %v153_v25 }
  0x69   :  { %v277_v45 = vpop.permute.xlu2 %276 }
  0x71   :  { %v308_v49 = vpop.permute.xlu2 %307 }
  0x7d   :  { %v176_v28 = vpop.permute.xlu0 %175 }
  0x7e   :  { %v166_v29 = vpop.permute.xlu1 %165 }
  0x85   :  { %v171_v31 = vpop.permute.xlu0 %170 }
  0x86   :  { %v161_v36 = vpop.permute.xlu1 %160 }
  0x8d   :  { %v321_v55 = vpop.permute.xlu0 %320 }
  0x8e   :  { %v323_v57 = vperm.slane %v321_v55, 0 }
  0xbf   :  { %v256_v37 = vpop.f32.mrf.mxu0 }
  0xc0   :  { %v257_v41 = vadd.f32 %v256_v37, %v161_v36 }
  0xc2   :  { %v268_v43 = vmax.f32 %v257_v41, 0.0 }
  0xc4   :  { %v262_v30 = vpop.f32.mrf.mxu3  ;;  %v259_v32 = vpop.f32.mrf.mxu2 }
  0xc5   :  { %v263_v34 = vadd.f32 %v262_v30, %v171_v31  ;;  %v260_v38 = vadd.f32 %v259_v32, %v166_v29 }
  0xc7   :  { %v270_v40 = vmax.f32 %v263_v34, 0.0  ;;  %v269_v42 = vmax.f32 %v260_v38, 0.0 }
  0xcc   :  { %v265_v33 = vpop.f32.mrf.mxu3 }
  0xcd   :  { %v266_v35 = vadd.f32 %v265_v33, %v176_v28 }
  0xcf   :  { %v271_v39 = vmax.f32 %v266_v35, 0.0 }
  0xd1   :  { %295 = vmatpush.msra.mxu1 %v271_v39 }
  0xd3   :  { %296 = vmatpush.msra.mxu1 %v270_v40 }
  0xd5   :  { %297 = vmatpush.msra.mxu1 %v269_v42 }
  0xd7   :  { %298 = vmatpush.msra.mxu1 %v268_v43 }
  0xd8   :  { %402 = vmatmul.msk.f32.vlgmr.msra.gmra.mxu1 %vm279_vm1, %v272_v44 }
 0x155   :  { %v300_v46 = vpop.f32.mrf.mxu1 }
 0x156   :  { %v301_v47 = vadd.f32 %v300_v46, %v277_v45 }
 0x158   :  { %v303_v48 = vmax.f32 %v301_v47, 0.0 }
 0x15a   :  { %v310_v50 = vmul.f32 %v308_v49, %v303_v48 }
 0x15c   :  { %v311_v51 = vrot.slane %v310_v50, 4 }
 0x15e   :  { %v312_v52 = vadd.f32 %v311_v51, %v310_v50 }
 0x160   :  { %v313_v53 = vrot.slane %v312_v52, 2 }
 0x162   :  { %v314_v54 = vadd.f32 %v313_v53, %v312_v52 }
 0x164   :  { %v315_v56 = vrot.slane %v314_v54, 1 }
 0x166   :  { %v316_v58 = vadd.f32 %v315_v56, %v314_v54 }
 0x168   :  { %v324_v59 = vadd.f32 %v323_v57, %v316_v58 }
 0x16a   :  { %325 = vst [vmem:[#allocation4] sm:$0x1] %v324_v59 }
 0x16b   :  { %336 = dma.vmem_to_hbm [thread:$0]  %s332_s10, 16, %s334_s12, [#allocation5]  }
 0x16c   :  { %466 = dma.done.wait [#allocation5], 16  }
 0x16d   :  { %467 = vsyncadd [#allocation5], 4294967280 }
 0x16e   :  { %341 = vsyncpa [#allocation5], 1 }

</bundles_post_ra>
